<compile_context>
chip_gen: v7x
topology: tpu7x:2x2x1
jax: 0.10.0
libtpu: 0.0.40
codegen_flags: <defaults>
</compile_context>

<pallas_src>
import functools

import jax
import jax.numpy as jnp
from jax.experimental import pallas as pl
from jax.experimental.pallas import tpu as pltpu

# ----- model hyper-params (small, consistent with the module's __init__) -----
D_MODEL = 32
N_HEAD = 4
DIM_FF = 64
HEAD_DIM = D_MODEL // N_HEAD
LN_EPS = 1e-5          # PyTorch LayerNorm default


def _layer_norm_ref(x, gamma, beta):
    mu = jnp.mean(x, axis=-1, keepdims=True)
    var = jnp.mean((x - mu) ** 2, axis=-1, keepdims=True)
    return (x - mu) * jax.lax.rsqrt(var + LN_EPS) * gamma + beta


def _layer_norm_fast(x, gamma, beta):
    # one-pass variance: E[x^2] - mu^2  (halves cross-lane reduction pushes)
    mu = jnp.mean(x, axis=-1, keepdims=True)
    var = jnp.mean(x * x, axis=-1, keepdims=True) - mu * mu
    return (x - mu) * jax.lax.rsqrt(var + LN_EPS) * gamma + beta


def encoder_layer_kernel(src_ref, mask_ref, w_qkv_ref, w_out_ref,
                         w1_ref, w2_ref, par_ref, out_ref, *, bt, seq_len):
    """One batch block (bt sequences) per grid step.

    src_ref   : (bt, L, D)      mask_ref : (bt, L, L)
    w_qkv_ref : (D, 5D)  columns = [Wq_self*s | Wk_self | Wq_other*s | Wk_other | Wv]
                (the 1/sqrt(head_dim) scaling is pre-folded into the q columns)
    par_ref   : (8, DIM_FF) packed rows = [b_v, b_out, b1, b2, ln1_g, ln1_b, ln2_g, ln2_b]
    """
    L, D, F, H, HD = seq_len, D_MODEL, DIM_FF, N_HEAD, HEAD_DIM
    rows = bt * L

    x = src_ref[...].reshape(rows, D)                       # (bt*L, D)

    par = par_ref[...]                                      # (8, F)
    b_v = par[0:1, :D]
    b_out = par[1:2, :D]
    b1 = par[2:3, :F]
    b2 = par[3:4, :D]
    ln1_g, ln1_b = par[4:5, :D], par[5:6, :D]
    ln2_g, ln2_b = par[6:7, :D], par[7:8, :D]

    # --- fused projections (one MXU pass, 160 output lanes) ---
    qkv = jnp.dot(x, w_qkv_ref[...], preferred_element_type=jnp.float32)  # (rows, 5D)

    def to_heads(t2d):
        # (bt*L, D) -> (H*bt, L, HD); head folded into the leading batch axis
        t = t2d.reshape(bt, L, D)
        return jnp.concatenate(
            [t[:, :, h * HD:(h + 1) * HD] for h in range(H)], axis=0)

    q_s = to_heads(qkv[:, 0 * D:1 * D])        # scaling pre-folded into weights
    k_s = to_heads(qkv[:, 1 * D:2 * D])
    q_o = to_heads(qkv[:, 2 * D:3 * D])
    k_o = to_heads(qkv[:, 3 * D:4 * D])
    v_h = to_heads(qkv[:, 4 * D:5 * D] + b_v)  # bias_v broadcast over rows

    # --- agent-aware attention: two batched score contractions + select ---
    s_self = jnp.einsum('gld,gmd->glm', q_s, k_s,
                        preferred_element_type=jnp.float32)   # (H*bt, L, L)
    s_other = jnp.einsum('gld,gmd->glm', q_o, k_o,
                         preferred_element_type=jnp.float32)

    # select in 4-D so the (bt, L, L) mask broadcasts over the head axis;
    # leading-dim reshapes keep the minor (L, L) tile intact (free).
    mask4 = mask_ref[...][None]                               # (1, bt, L, L)
    s = jnp.where(mask4 > 0.5,
                  s_self.reshape(H, bt, L, L),
                  s_other.reshape(H, bt, L, L))               # (H, bt, L, L)

    # numerically-stable softmax; normalization deferred past the P·V matmul
    s = s - jnp.max(s, axis=-1, keepdims=True)
    p = jnp.exp(s)
    denom = jnp.sum(p, axis=-1, keepdims=True)                # (H, bt, L, 1)

    p = p.reshape(H * bt, L, L)
    ctx_h = jnp.einsum('glm,gmd->gld', p, v_h,
                       preferred_element_type=jnp.float32)    # (H*bt, L, HD)
    ctx_h = ctx_h * (1.0 / denom.reshape(H * bt, L, 1))       # scale HD lanes, not L

    ctx = jnp.concatenate(
        [ctx_h[h * bt:(h + 1) * bt] for h in range(H)], axis=-1)   # (bt, L, D)
    ctx = ctx.reshape(rows, D)

    attn_out = jnp.dot(ctx, w_out_ref[...],
                       preferred_element_type=jnp.float32) + b_out

    # --- residual + LayerNorm 1 ---
    h1 = _layer_norm_fast(x + attn_out, ln1_g, ln1_b)

    # --- feed-forward (relu) ---
    ff = jnp.dot(h1, w1_ref[...], preferred_element_type=jnp.float32) + b1
    ff = jnp.maximum(ff, 0.0)
    ff = jnp.dot(ff, w2_ref[...], preferred_element_type=jnp.float32) + b2

    # --- residual + LayerNorm 2 ---
    out = _layer_norm_fast(h1 + ff, ln2_g, ln2_b)
    out_ref[...] = out.reshape(bt, L, D)


def agent_aware_encoder_layer(src, so_mask, packed, *, block_b=None):
    """src: (B, L, D) f32, so_mask: (B, L, L) f32, packed: see pack_params."""
    B, L, D = src.shape
    F = packed["w1"].shape[1]

    if block_b is None:
        # batch rows per grid step; when B allows, keep >=2 grid iterations so
        # the two TensorCores on v7x both get work via the "parallel" axis.
        block_b = min(B, 8)
        if B > 1:
            block_b = min(block_b, max(1, B // 2))
        while B % block_b:
            block_b -= 1
    assert B % block_b == 0
    grid = (B // block_b,)

    kernel = functools.partial(encoder_layer_kernel, bt=block_b, seq_len=L)
    const2 = lambda b: (0, 0)

    return pl.pallas_call(
        kernel,
        out_shape=jax.ShapeDtypeStruct((B, L, D), jnp.float32),
        grid_spec=pltpu.PrefetchScalarGridSpec(
            num_scalar_prefetch=0,
            grid=grid,
            in_specs=[
                pl.BlockSpec((block_b, L, D), lambda b: (b, 0, 0)),   # src
                pl.BlockSpec((block_b, L, L), lambda b: (b, 0, 0)),   # self/other mask
                pl.BlockSpec((D, 5 * D), const2),                     # fused qkv weights
                pl.BlockSpec((D, D), const2),                         # w_out
                pl.BlockSpec((D, F), const2),                         # w1
                pl.BlockSpec((F, D), const2),                         # w2
                pl.BlockSpec((8, F), const2),                         # packed biases/LN
            ],
            out_specs=pl.BlockSpec((block_b, L, D), lambda b: (b, 0, 0)),
        ),
        compiler_params=pltpu.CompilerParams(
            dimension_semantics=("parallel",)),
    )(src, so_mask, packed["w_qkv"], packed["w_out"],
      packed["w1"], packed["w2"], packed["small"])


# ---------------- parameter construction / packing ----------------
def make_params(key):
    ks = jax.random.split(key, 8)
    scale = 0.08
    return {
        "w_attn": scale * jax.random.normal(ks[0], (5, D_MODEL, D_MODEL), jnp.float32),
        "b_v":    scale * jax.random.normal(ks[1], (1, D_MODEL), jnp.float32),
        "w_out":  scale * jax.random.normal(ks[2], (D_MODEL, D_MODEL), jnp.float32),
        "b_out":  scale * jax.random.normal(ks[3], (1, D_MODEL), jnp.float32),
        "ln1":    jnp.stack([jnp.ones((D_MODEL,), jnp.float32),
                             jnp.zeros((D_MODEL,), jnp.float32)]),
        "w1":     scale * jax.random.normal(ks[4], (D_MODEL, DIM_FF), jnp.float32),
        "b1":     scale * jax.random.normal(ks[5], (1, DIM_FF), jnp.float32),
        "w2":     scale * jax.random.normal(ks[6], (DIM_FF, D_MODEL), jnp.float32),
        "b2":     scale * jax.random.normal(ks[7], (1, D_MODEL), jnp.float32),
        "ln2":    jnp.stack([jnp.ones((D_MODEL,), jnp.float32),
                             jnp.zeros((D_MODEL,), jnp.float32)]),
    }


def pack_params(p):
    """One-time host transform: fold q scaling into weights, fuse the 5 attn
    projections into a (D, 5D) slab, pack the 8 tiny vectors into one (8, F)."""
    D, F = D_MODEL, DIM_FF
    scaling = 1.0 / (HEAD_DIM ** 0.5)
    w = p["w_attn"]
    w_qkv = jnp.concatenate(
        [w[0] * scaling, w[1], w[2] * scaling, w[3], w[4]], axis=1)   # (D, 5D)
    small = jnp.zeros((8, F), jnp.float32)
    small = small.at[0, :D].set(p["b_v"][0])
    small = small.at[1, :D].set(p["b_out"][0])
    small = small.at[2, :F].set(p["b1"][0])
    small = small.at[3, :D].set(p["b2"][0])
    small = small.at[4, :D].set(p["ln1"][0])
    small = small.at[5, :D].set(p["ln1"][1])
    small = small.at[6, :D].set(p["ln2"][0])
    small = small.at[7, :D].set(p["ln2"][1])
    return {"w_qkv": w_qkv, "w_out": p["w_out"], "w1": p["w1"],
            "w2": p["w2"], "small": small}


# ---------------- pure-JAX reference (same math, raw params) ----------------
def reference_forward(src, so_mask, p):
    def one(x, m):
        scaling = 1.0 / (HEAD_DIM ** 0.5)
        qs = x @ p["w_attn"][0] * scaling
        ks = x @ p["w_attn"][1]
        qo = x @ p["w_attn"][2] * scaling
        ko = x @ p["w_attn"][3]
        v = x @ p["w_attn"][4] + p["b_v"][0]
        ctx = []
        for h in range(N_HEAD):
            sl = slice(h * HEAD_DIM, (h + 1) * HEAD_DIM)
            a = m * (qs[:, sl] @ ks[:, sl].T) + (1.0 - m) * (qo[:, sl] @ ko[:, sl].T)
            a = jax.nn.softmax(a, axis=-1)
            ctx.append(a @ v[:, sl])
        attn_out = jnp.concatenate(ctx, axis=-1) @ p["w_out"] + p["b_out"][0]
        h1 = _layer_norm_ref(x + attn_out, p["ln1"][0], p["ln1"][1])
        ff = jnp.maximum(h1 @ p["w1"] + p["b1"][0], 0.0) @ p["w2"] + p["b2"][0]
        return _layer_norm_ref(h1 + ff, p["ln2"][0], p["ln2"][1])
    return jax.vmap(one)(src, so_mask)


if __name__ == "__main__":
    B, L = 2, 8
    key = jax.random.PRNGKey(0)
    k_src, k_par = jax.random.split(key)

    src = jax.random.normal(k_src, (B, L, D_MODEL), jnp.float32)

    # self/other mask: tokens belong to 2 agents, alternating along the sequence.
    agent_ids = jnp.arange(L) % 2
    so_mask_single = (agent_ids[:, None] == agent_ids[None, :]).astype(jnp.float32)
    so_mask = jnp.broadcast_to(so_mask_single, (B, L, L))

    params = make_params(k_par)
    packed = pack_params(params)

    out = agent_aware_encoder_layer(src, so_mask, packed)
    out = jax.block_until_ready(out)

    ref = reference_forward(src, so_mask, params)
    assert out.shape == (B, L, D_MODEL)
    assert jnp.allclose(out, ref, atol=1e-4, rtol=1e-4), "mismatch vs reference"
    print("KERNEL_OK")
</pallas_src>

<mosaic_0001>
module attributes {stable_mosaic.version = 11 : i64} {
  func.func @encoder_layer_kernel(%arg0: i32, %arg1: memref<1x8x32xf32, #tpu.memory_space<vmem>>, %arg2: memref<1x8x8xf32, #tpu.memory_space<vmem>>, %arg3: memref<32x160xf32, #tpu.memory_space<vmem>>, %arg4: memref<32x32xf32, #tpu.memory_space<vmem>>, %arg5: memref<32x64xf32, #tpu.memory_space<vmem>>, %arg6: memref<64x32xf32, #tpu.memory_space<vmem>>, %arg7: memref<8x64xf32, #tpu.memory_space<vmem>>, %arg8: memref<1x8x32xf32, #tpu.memory_space<vmem>>) attributes {dimension_semantics = [#tpu.dimension_semantics<parallel>], iteration_bounds = array<i64: 2>, scalar_prefetch = 0 : i64, scratch_operands = 0 : i64, tpu.core_type = #tpu.core_type<tc>, window_params = [{transform_indices = @transform_0, window_bounds = array<i64: 1, 8, 32>}, {transform_indices = @transform_1, window_bounds = array<i64: 1, 8, 8>}, {pipeline_mode = #tpu.pipeline_mode<synchronous>, transform_indices = @transform_2, window_bounds = array<i64: 32, 160>}, {pipeline_mode = #tpu.pipeline_mode<synchronous>, transform_indices = @transform_3, window_bounds = array<i64: 32, 32>}, {pipeline_mode = #tpu.pipeline_mode<synchronous>, transform_indices = @transform_4, window_bounds = array<i64: 32, 64>}, {pipeline_mode = #tpu.pipeline_mode<synchronous>, transform_indices = @transform_5, window_bounds = array<i64: 64, 32>}, {pipeline_mode = #tpu.pipeline_mode<synchronous>, transform_indices = @transform_6, window_bounds = array<i64: 8, 64>}, {transform_indices = @transform_7, window_bounds = array<i64: 1, 8, 32>}]} {
    %c0 = arith.constant 0 : index
    %c0_0 = arith.constant 0 : index
    %c0_1 = arith.constant 0 : index
    %0 = vector.load %arg1[%c0, %c0_0, %c0_1] : memref<1x8x32xf32, #tpu.memory_space<vmem>>, vector<1x8x32xf32>
    %1 = vector.shape_cast %0 : vector<1x8x32xf32> to vector<8x32xf32>
    %c0_2 = arith.constant 0 : index
    %c0_3 = arith.constant 0 : index
    %2 = vector.load %arg7[%c0_2, %c0_3] : memref<8x64xf32, #tpu.memory_space<vmem>>, vector<8x64xf32>
    %3 = vector.extract_strided_slice %2 {offsets = [0, 0], sizes = [1, 32], strides = [1, 1]} : vector<8x64xf32> to vector<1x32xf32>
    %4 = vector.extract_strided_slice %2 {offsets = [1, 0], sizes = [1, 32], strides = [1, 1]} : vector<8x64xf32> to vector<1x32xf32>
    %5 = vector.extract_strided_slice %2 {offsets = [2, 0], sizes = [1, 64], strides = [1, 1]} : vector<8x64xf32> to vector<1x64xf32>
    %6 = vector.extract_strided_slice %2 {offsets = [3, 0], sizes = [1, 32], strides = [1, 1]} : vector<8x64xf32> to vector<1x32xf32>
    %7 = vector.extract_strided_slice %2 {offsets = [4, 0], sizes = [1, 32], strides = [1, 1]} : vector<8x64xf32> to vector<1x32xf32>
    %8 = vector.extract_strided_slice %2 {offsets = [5, 0], sizes = [1, 32], strides = [1, 1]} : vector<8x64xf32> to vector<1x32xf32>
    %9 = vector.extract_strided_slice %2 {offsets = [6, 0], sizes = [1, 32], strides = [1, 1]} : vector<8x64xf32> to vector<1x32xf32>
    %10 = vector.extract_strided_slice %2 {offsets = [7, 0], sizes = [1, 32], strides = [1, 1]} : vector<8x64xf32> to vector<1x32xf32>
    %c0_4 = arith.constant 0 : index
    %c0_5 = arith.constant 0 : index
    %11 = vector.load %arg3[%c0_4, %c0_5] : memref<32x160xf32, #tpu.memory_space<vmem>>, vector<32x160xf32>
    %cst = arith.constant dense<0.000000e+00> : vector<8x160xf32>
    %12 = tpu.matmul %1, %11, %cst {dimension_numbers = #tpu.dot_dimension_numbers<[1], [0], [0], [1], [0, 0, 1, 1], [], []>} : vector<8x32xf32>, vector<32x160xf32>, vector<8x160xf32> -> vector<8x160xf32>
    %13 = vector.extract_strided_slice %12 {offsets = [0, 0], sizes = [8, 32], strides = [1, 1]} : vector<8x160xf32> to vector<8x32xf32>
    %14 = vector.shape_cast %13 : vector<8x32xf32> to vector<1x8x32xf32>
    %15 = vector.extract_strided_slice %14 {offsets = [0, 0, 0], sizes = [1, 8, 8], strides = [1, 1, 1]} : vector<1x8x32xf32> to vector<1x8x8xf32>
    %16 = vector.extract_strided_slice %14 {offsets = [0, 0, 8], sizes = [1, 8, 8], strides = [1, 1, 1]} : vector<1x8x32xf32> to vector<1x8x8xf32>
    %17 = vector.extract_strided_slice %14 {offsets = [0, 0, 16], sizes = [1, 8, 8], strides = [1, 1, 1]} : vector<1x8x32xf32> to vector<1x8x8xf32>
    %18 = vector.extract_strided_slice %14 {offsets = [0, 0, 24], sizes = [1, 8, 8], strides = [1, 1, 1]} : vector<1x8x32xf32> to vector<1x8x8xf32>
    %19 = tpu.concatenate %15, %16, %17, %18 in 0 : vector<1x8x8xf32>, vector<1x8x8xf32>, vector<1x8x8xf32>, vector<1x8x8xf32> -> vector<4x8x8xf32>
    %20 = vector.extract_strided_slice %12 {offsets = [0, 32], sizes = [8, 32], strides = [1, 1]} : vector<8x160xf32> to vector<8x32xf32>
    %21 = vector.shape_cast %20 : vector<8x32xf32> to vector<1x8x32xf32>
    %22 = vector.extract_strided_slice %21 {offsets = [0, 0, 0], sizes = [1, 8, 8], strides = [1, 1, 1]} : vector<1x8x32xf32> to vector<1x8x8xf32>
    %23 = vector.extract_strided_slice %21 {offsets = [0, 0, 8], sizes = [1, 8, 8], strides = [1, 1, 1]} : vector<1x8x32xf32> to vector<1x8x8xf32>
    %24 = vector.extract_strided_slice %21 {offsets = [0, 0, 16], sizes = [1, 8, 8], strides = [1, 1, 1]} : vector<1x8x32xf32> to vector<1x8x8xf32>
    %25 = vector.extract_strided_slice %21 {offsets = [0, 0, 24], sizes = [1, 8, 8], strides = [1, 1, 1]} : vector<1x8x32xf32> to vector<1x8x8xf32>
    %26 = tpu.concatenate %22, %23, %24, %25 in 0 : vector<1x8x8xf32>, vector<1x8x8xf32>, vector<1x8x8xf32>, vector<1x8x8xf32> -> vector<4x8x8xf32>
    %27 = vector.extract_strided_slice %12 {offsets = [0, 64], sizes = [8, 32], strides = [1, 1]} : vector<8x160xf32> to vector<8x32xf32>
    %28 = vector.shape_cast %27 : vector<8x32xf32> to vector<1x8x32xf32>
    %29 = vector.extract_strided_slice %28 {offsets = [0, 0, 0], sizes = [1, 8, 8], strides = [1, 1, 1]} : vector<1x8x32xf32> to vector<1x8x8xf32>
    %30 = vector.extract_strided_slice %28 {offsets = [0, 0, 8], sizes = [1, 8, 8], strides = [1, 1, 1]} : vector<1x8x32xf32> to vector<1x8x8xf32>
    %31 = vector.extract_strided_slice %28 {offsets = [0, 0, 16], sizes = [1, 8, 8], strides = [1, 1, 1]} : vector<1x8x32xf32> to vector<1x8x8xf32>
    %32 = vector.extract_strided_slice %28 {offsets = [0, 0, 24], sizes = [1, 8, 8], strides = [1, 1, 1]} : vector<1x8x32xf32> to vector<1x8x8xf32>
    %33 = tpu.concatenate %29, %30, %31, %32 in 0 : vector<1x8x8xf32>, vector<1x8x8xf32>, vector<1x8x8xf32>, vector<1x8x8xf32> -> vector<4x8x8xf32>
    %34 = vector.extract_strided_slice %12 {offsets = [0, 96], sizes = [8, 32], strides = [1, 1]} : vector<8x160xf32> to vector<8x32xf32>
    %35 = vector.shape_cast %34 : vector<8x32xf32> to vector<1x8x32xf32>
    %36 = vector.extract_strided_slice %35 {offsets = [0, 0, 0], sizes = [1, 8, 8], strides = [1, 1, 1]} : vector<1x8x32xf32> to vector<1x8x8xf32>
    %37 = vector.extract_strided_slice %35 {offsets = [0, 0, 8], sizes = [1, 8, 8], strides = [1, 1, 1]} : vector<1x8x32xf32> to vector<1x8x8xf32>
    %38 = vector.extract_strided_slice %35 {offsets = [0, 0, 16], sizes = [1, 8, 8], strides = [1, 1, 1]} : vector<1x8x32xf32> to vector<1x8x8xf32>
    %39 = vector.extract_strided_slice %35 {offsets = [0, 0, 24], sizes = [1, 8, 8], strides = [1, 1, 1]} : vector<1x8x32xf32> to vector<1x8x8xf32>
    %40 = tpu.concatenate %36, %37, %38, %39 in 0 : vector<1x8x8xf32>, vector<1x8x8xf32>, vector<1x8x8xf32>, vector<1x8x8xf32> -> vector<4x8x8xf32>
    %41 = vector.extract_strided_slice %12 {offsets = [0, 128], sizes = [8, 32], strides = [1, 1]} : vector<8x160xf32> to vector<8x32xf32>
    %42 = vector.broadcast %3 : vector<1x32xf32> to vector<8x32xf32>
    %43 = arith.addf %41, %42 : vector<8x32xf32>
    %44 = vector.shape_cast %43 : vector<8x32xf32> to vector<1x8x32xf32>
    %45 = vector.extract_strided_slice %44 {offsets = [0, 0, 0], sizes = [1, 8, 8], strides = [1, 1, 1]} : vector<1x8x32xf32> to vector<1x8x8xf32>
    %46 = vector.extract_strided_slice %44 {offsets = [0, 0, 8], sizes = [1, 8, 8], strides = [1, 1, 1]} : vector<1x8x32xf32> to vector<1x8x8xf32>
    %47 = vector.extract_strided_slice %44 {offsets = [0, 0, 16], sizes = [1, 8, 8], strides = [1, 1, 1]} : vector<1x8x32xf32> to vector<1x8x8xf32>
    %48 = vector.extract_strided_slice %44 {offsets = [0, 0, 24], sizes = [1, 8, 8], strides = [1, 1, 1]} : vector<1x8x32xf32> to vector<1x8x8xf32>
    %49 = tpu.concatenate %45, %46, %47, %48 in 0 : vector<1x8x8xf32>, vector<1x8x8xf32>, vector<1x8x8xf32>, vector<1x8x8xf32> -> vector<4x8x8xf32>
    "tpu.trace_start"() <{level = 10 : i32, message = "gld,gmd->glm"}> : () -> ()
    %cst_6 = arith.constant dense<0.000000e+00> : vector<4x8x8xf32>
    %50 = tpu.matmul %19, %26, %cst_6 {dimension_numbers = #tpu.dot_dimension_numbers<[2], [2], [1], [1], [0, 0, 0, 1, 1, 1], [0], [0]>} : vector<4x8x8xf32>, vector<4x8x8xf32>, vector<4x8x8xf32> -> vector<4x8x8xf32>
    %cst_7 = arith.constant dense<0.000000e+00> : vector<4x8x8xf32>
    %51 = tpu.matmul %33, %40, %cst_7 {dimension_numbers = #tpu.dot_dimension_numbers<[2], [2], [1], [1], [0, 0, 0, 1, 1, 1], [0], [0]>} : vector<4x8x8xf32>, vector<4x8x8xf32>, vector<4x8x8xf32> -> vector<4x8x8xf32>
    "tpu.trace_stop"() : () -> ()
    %c0_8 = arith.constant 0 : index
    %c0_9 = arith.constant 0 : index
    %c0_10 = arith.constant 0 : index
    %52 = vector.load %arg2[%c0_8, %c0_9, %c0_10] : memref<1x8x8xf32, #tpu.memory_space<vmem>>, vector<1x8x8xf32>
    %53 = vector.shape_cast %52 : vector<1x8x8xf32> to vector<1x1x8x8xf32>
    %cst_11 = arith.constant 5.000000e-01 : f32
    %54 = vector.broadcast %cst_11 : f32 to vector<1x1x8x8xf32>
    %55 = arith.cmpf ogt, %53, %54 : vector<1x1x8x8xf32>
    %56 = vector.shape_cast %50 : vector<4x8x8xf32> to vector<4x1x8x8xf32>
    %57 = vector.shape_cast %51 : vector<4x8x8xf32> to vector<4x1x8x8xf32>
    %58 = vector.shape_cast %55 : vector<1x1x8x8xi1> to vector<1x1x8x8xi1>
    %59 = vector.broadcast %58 : vector<1x1x8x8xi1> to vector<4x1x8x8xi1>
    %60 = arith.select %59, %56, %57 : vector<4x1x8x8xi1>, vector<4x1x8x8xf32>
    %cst_12 = arith.constant dense<0xFF800000> : vector<4x1x8xf32>
    %61 = vector.multi_reduction <maximumf>, %60, %cst_12 [3] : vector<4x1x8x8xf32> to vector<4x1x8xf32>
    %62 = vector.shape_cast %61 : vector<4x1x8xf32> to vector<4x1x8x1xf32>
    %63 = vector.broadcast %62 : vector<4x1x8x1xf32> to vector<4x1x8x8xf32>
    %64 = arith.subf %60, %63 : vector<4x1x8x8xf32>
    %65 = math.exp %64 : vector<4x1x8x8xf32>
    %cst_13 = arith.constant dense<0.000000e+00> : vector<4x1x8xf32>
    %66 = vector.multi_reduction <add>, %65, %cst_13 [3] : vector<4x1x8x8xf32> to vector<4x1x8xf32>
    %67 = vector.shape_cast %66 : vector<4x1x8xf32> to vector<4x1x8x1xf32>
    %68 = vector.shape_cast %65 : vector<4x1x8x8xf32> to vector<4x8x8xf32>
    "tpu.trace_start"() <{level = 10 : i32, message = "glm,gmd->gld"}> : () -> ()
    %cst_14 = arith.constant dense<0.000000e+00> : vector<4x8x8xf32>
    %69 = tpu.matmul %68, %49, %cst_14 {dimension_numbers = #tpu.dot_dimension_numbers<[2], [1], [1], [2], [0, 0, 0, 1, 1, 2], [0], [0]>} : vector<4x8x8xf32>, vector<4x8x8xf32>, vector<4x8x8xf32> -> vector<4x8x8xf32>
    "tpu.trace_stop"() : () -> ()
    %70 = vector.shape_cast %67 : vector<4x1x8x1xf32> to vector<4x8x1xf32>
    %cst_15 = arith.constant 1.000000e+00 : f32
    %71 = vector.broadcast %cst_15 : f32 to vector<4x8x1xf32>
    %72 = arith.divf %71, %70 : vector<4x8x1xf32>
    %73 = vector.broadcast %72 : vector<4x8x1xf32> to vector<4x8x8xf32>
    %74 = arith.mulf %69, %73 : vector<4x8x8xf32>
    %75 = vector.extract_strided_slice %74 {offsets = [0, 0, 0], sizes = [1, 8, 8], strides = [1, 1, 1]} : vector<4x8x8xf32> to vector<1x8x8xf32>
    %76 = vector.extract_strided_slice %74 {offsets = [1, 0, 0], sizes = [1, 8, 8], strides = [1, 1, 1]} : vector<4x8x8xf32> to vector<1x8x8xf32>
    %77 = vector.extract_strided_slice %74 {offsets = [2, 0, 0], sizes = [1, 8, 8], strides = [1, 1, 1]} : vector<4x8x8xf32> to vector<1x8x8xf32>
    %78 = vector.extract_strided_slice %74 {offsets = [3, 0, 0], sizes = [1, 8, 8], strides = [1, 1, 1]} : vector<4x8x8xf32> to vector<1x8x8xf32>
    %79 = tpu.concatenate %75, %76, %77, %78 in 2 : vector<1x8x8xf32>, vector<1x8x8xf32>, vector<1x8x8xf32>, vector<1x8x8xf32> -> vector<1x8x32xf32>
    %80 = vector.shape_cast %79 : vector<1x8x32xf32> to vector<8x32xf32>
    %c0_16 = arith.constant 0 : index
    %c0_17 = arith.constant 0 : index
    %81 = vector.load %arg4[%c0_16, %c0_17] : memref<32x32xf32, #tpu.memory_space<vmem>>, vector<32x32xf32>
    %cst_18 = arith.constant dense<0.000000e+00> : vector<8x32xf32>
    %82 = tpu.matmul %80, %81, %cst_18 {dimension_numbers = #tpu.dot_dimension_numbers<[1], [0], [0], [1], [0, 0, 1, 1], [], []>} : vector<8x32xf32>, vector<32x32xf32>, vector<8x32xf32> -> vector<8x32xf32>
    %83 = vector.broadcast %4 : vector<1x32xf32> to vector<8x32xf32>
    %84 = arith.addf %82, %83 : vector<8x32xf32>
    %85 = arith.addf %1, %84 : vector<8x32xf32>
    %cst_19 = arith.constant dense<0.000000e+00> : vector<8xf32>
    %86 = vector.multi_reduction <add>, %85, %cst_19 [1] : vector<8x32xf32> to vector<8xf32>
    %87 = vector.shape_cast %86 : vector<8xf32> to vector<8x1xf32>
    %cst_20 = arith.constant 3.200000e+01 : f32
    %88 = vector.broadcast %cst_20 : f32 to vector<8x1xf32>
    %89 = arith.divf %87, %88 : vector<8x1xf32>
    %90 = arith.mulf %85, %85 : vector<8x32xf32>
    %cst_21 = arith.constant dense<0.000000e+00> : vector<8xf32>
    %91 = vector.multi_reduction <add>, %90, %cst_21 [1] : vector<8x32xf32> to vector<8xf32>
    %92 = vector.shape_cast %91 : vector<8xf32> to vector<8x1xf32>
    %cst_22 = arith.constant 3.200000e+01 : f32
    %93 = vector.broadcast %cst_22 : f32 to vector<8x1xf32>
    %94 = arith.divf %92, %93 : vector<8x1xf32>
    %95 = arith.mulf %89, %89 : vector<8x1xf32>
    %96 = arith.subf %94, %95 : vector<8x1xf32>
    %97 = vector.broadcast %89 : vector<8x1xf32> to vector<8x32xf32>
    %98 = arith.subf %85, %97 : vector<8x32xf32>
    %cst_23 = arith.constant 9.99999974E-6 : f32
    %99 = vector.broadcast %cst_23 : f32 to vector<8x1xf32>
    %100 = arith.addf %96, %99 : vector<8x1xf32>
    %101 = math.rsqrt %100 : vector<8x1xf32>
    %102 = vector.broadcast %101 : vector<8x1xf32> to vector<8x32xf32>
    %103 = arith.mulf %98, %102 : vector<8x32xf32>
    %104 = vector.broadcast %7 : vector<1x32xf32> to vector<8x32xf32>
    %105 = arith.mulf %103, %104 : vector<8x32xf32>
    %106 = vector.broadcast %8 : vector<1x32xf32> to vector<8x32xf32>
    %107 = arith.addf %105, %106 : vector<8x32xf32>
    %c0_24 = arith.constant 0 : index
    %c0_25 = arith.constant 0 : index
    %108 = vector.load %arg5[%c0_24, %c0_25] : memref<32x64xf32, #tpu.memory_space<vmem>>, vector<32x64xf32>
    %cst_26 = arith.constant dense<0.000000e+00> : vector<8x64xf32>
    %109 = tpu.matmul %107, %108, %cst_26 {dimension_numbers = #tpu.dot_dimension_numbers<[1], [0], [0], [1], [0, 0, 1, 1], [], []>} : vector<8x32xf32>, vector<32x64xf32>, vector<8x64xf32> -> vector<8x64xf32>
    %110 = vector.broadcast %5 : vector<1x64xf32> to vector<8x64xf32>
    %111 = arith.addf %109, %110 : vector<8x64xf32>
    %cst_27 = arith.constant 0.000000e+00 : f32
    %112 = vector.broadcast %cst_27 : f32 to vector<8x64xf32>
    %113 = arith.maximumf %111, %112 : vector<8x64xf32>
    %c0_28 = arith.constant 0 : index
    %c0_29 = arith.constant 0 : index
    %114 = vector.load %arg6[%c0_28, %c0_29] : memref<64x32xf32, #tpu.memory_space<vmem>>, vector<64x32xf32>
    %cst_30 = arith.constant dense<0.000000e+00> : vector<8x32xf32>
    %115 = tpu.matmul %113, %114, %cst_30 {dimension_numbers = #tpu.dot_dimension_numbers<[1], [0], [0], [1], [0, 0, 1, 1], [], []>} : vector<8x64xf32>, vector<64x32xf32>, vector<8x32xf32> -> vector<8x32xf32>
    %116 = vector.broadcast %6 : vector<1x32xf32> to vector<8x32xf32>
    %117 = arith.addf %115, %116 : vector<8x32xf32>
    %118 = arith.addf %107, %117 : vector<8x32xf32>
    %cst_31 = arith.constant dense<0.000000e+00> : vector<8xf32>
    %119 = vector.multi_reduction <add>, %118, %cst_31 [1] : vector<8x32xf32> to vector<8xf32>
    %120 = vector.shape_cast %119 : vector<8xf32> to vector<8x1xf32>
    %cst_32 = arith.constant 3.200000e+01 : f32
    %121 = vector.broadcast %cst_32 : f32 to vector<8x1xf32>
    %122 = arith.divf %120, %121 : vector<8x1xf32>
    %123 = arith.mulf %118, %118 : vector<8x32xf32>
    %cst_33 = arith.constant dense<0.000000e+00> : vector<8xf32>
    %124 = vector.multi_reduction <add>, %123, %cst_33 [1] : vector<8x32xf32> to vector<8xf32>
    %125 = vector.shape_cast %124 : vector<8xf32> to vector<8x1xf32>
    %cst_34 = arith.constant 3.200000e+01 : f32
    %126 = vector.broadcast %cst_34 : f32 to vector<8x1xf32>
    %127 = arith.divf %125, %126 : vector<8x1xf32>
    %128 = arith.mulf %122, %122 : vector<8x1xf32>
    %129 = arith.subf %127, %128 : vector<8x1xf32>
    %130 = vector.broadcast %122 : vector<8x1xf32> to vector<8x32xf32>
    %131 = arith.subf %118, %130 : vector<8x32xf32>
    %cst_35 = arith.constant 9.99999974E-6 : f32
    %132 = vector.broadcast %cst_35 : f32 to vector<8x1xf32>
    %133 = arith.addf %129, %132 : vector<8x1xf32>
    %134 = math.rsqrt %133 : vector<8x1xf32>
    %135 = vector.broadcast %134 : vector<8x1xf32> to vector<8x32xf32>
    %136 = arith.mulf %131, %135 : vector<8x32xf32>
    %137 = vector.broadcast %9 : vector<1x32xf32> to vector<8x32xf32>
    %138 = arith.mulf %136, %137 : vector<8x32xf32>
    %139 = vector.broadcast %10 : vector<1x32xf32> to vector<8x32xf32>
    %140 = arith.addf %138, %139 : vector<8x32xf32>
    %141 = vector.shape_cast %140 : vector<8x32xf32> to vector<1x8x32xf32>
    %c0_36 = arith.constant 0 : index
    %c0_37 = arith.constant 0 : index
    %c0_38 = arith.constant 0 : index
    %142 = vector.load %arg8[%c0_36, %c0_37, %c0_38] : memref<1x8x32xf32, #tpu.memory_space<vmem>>, vector<1x8x32xf32>
    tpu.vector_store %arg8[%c0_36, %c0_37, %c0_38], %141 {strides = array<i32>} : memref<1x8x32xf32, #tpu.memory_space<vmem>>, vector<1x8x32xf32>,
    return
  }
  func.func @transform_0(%arg0: i32) -> (i32, i32, i32) {
    %c0_i32 = arith.constant 0 : i32
    %c0_i32_0 = arith.constant 0 : i32
    %c0_i32_1 = arith.constant 0 : i32
    return %arg0, %c0_i32, %c0_i32_0 : i32, i32, i32
  }
  func.func @transform_1(%arg0: i32) -> (i32, i32, i32) {
    %c0_i32 = arith.constant 0 : i32
    %c0_i32_0 = arith.constant 0 : i32
    %c0_i32_1 = arith.constant 0 : i32
    return %arg0, %c0_i32, %c0_i32_0 : i32, i32, i32
  }
  func.func @transform_2(%arg0: i32) -> (i32, i32) {
    %c0_i32 = arith.constant 0 : i32
    %c0_i32_0 = arith.constant 0 : i32
    %c0_i32_1 = arith.constant 0 : i32
    return %c0_i32, %c0_i32_0 : i32, i32
  }
  func.func @transform_3(%arg0: i32) -> (i32, i32) {
    %c0_i32 = arith.constant 0 : i32
    %c0_i32_0 = arith.constant 0 : i32
    %c0_i32_1 = arith.constant 0 : i32
    return %c0_i32, %c0_i32_0 : i32, i32
  }
  func.func @transform_4(%arg0: i32) -> (i32, i32) {
    %c0_i32 = arith.constant 0 : i32
    %c0_i32_0 = arith.constant 0 : i32
    %c0_i32_1 = arith.constant 0 : i32
    return %c0_i32, %c0_i32_0 : i32, i32
  }
  func.func @transform_5(%arg0: i32) -> (i32, i32) {
    %c0_i32 = arith.constant 0 : i32
    %c0_i32_0 = arith.constant 0 : i32
    %c0_i32_1 = arith.constant 0 : i32
    return %c0_i32, %c0_i32_0 : i32, i32
  }
  func.func @transform_6(%arg0: i32) -> (i32, i32) {
    %c0_i32 = arith.constant 0 : i32
    %c0_i32_0 = arith.constant 0 : i32
    %c0_i32_1 = arith.constant 0 : i32
    return %c0_i32, %c0_i32_0 : i32, i32
  }
  func.func @transform_7(%arg0: i32) -> (i32, i32, i32) {
    %c0_i32 = arith.constant 0 : i32
    %c0_i32_0 = arith.constant 0 : i32
    %c0_i32_1 = arith.constant 0 : i32
    return %arg0, %c0_i32, %c0_i32_0 : i32, i32, i32
  }
}

</mosaic_0001>

<bundles_post_ra>
// kernel: tpu_custom_call.1
= control target key start
LH: loop header
LB: loop body
LE: loop exit
PB: predicated region body
PF: predicated region fallthrough
CT: control target
= control target key end

     0   :  { %s2813_s0 = inlined_call_operand.hbm [shape: f32[2,8,32], index: 0, kind: input, shape index: {}]   ;;  %s2814_s1 = inlined_call_operand.hbm [shape: f32[2,8,8], index: 1, kind: input, shape index: {}]   ;;  %s2815_s2 = inlined_call_operand.vmem [shape: f32[32,160], index: 2, kind: input, shape index: {}]   ;;  %s2816_s3 = inlined_call_operand.vmem [shape: f32[32,32], index: 3, kind: input, shape index: {}]   ;;  %s2817_s4 = inlined_call_operand.hbm [shape: f32[32,64], index: 4, kind: input, shape index: {}]   ;;  %s2818_s5 = inlined_call_operand.vmem [shape: f32[64,32], index: 5, kind: input, shape index: {}]   ;;  %s2819_s6 = inlined_call_operand.vmem [shape: f32[8,64], index: 6, kind: input, shape index: {}]   ;;  %s2820_s7 = inlined_call_operand.hbm [shape: f32[2,8,32], index: 7, kind: output, shape index: {}]  }
   0x1   :  { %2828 = sst [smem:[#allocation16_spill]] %s2817_s4 }
   0x2   :  { %12 = vsyncpa [#allocation3], 0 }
   0x3   :  { %14 = vsyncpa [#allocation3 + $0x1], 0 }
   0x4   :  { %15 = vsyncpa [#allocation6], 0 }
   0x5   :  { %17 = vsyncpa [#allocation6 + $0x1], 0 }
   0x6   :  { %18 = vsyncpa [#allocation4], 0 }
   0x7   :  { %20 = vsyncpa [#allocation4 + $0x1], 0  ;;  %s2388_s24 = smov 0   ;;  %s2390_s25 = smov 0  }
   0x8   :  { %s2392_s26 = smov 0   ;;  %s2394_s27 = smov 0  }
   0x9 LB: > { %2829 = sst [smem:[#allocation13_spill]] %s2324_s26  ;;  %s2409_s28 = sadd.s32 4294967295, %s2328_s27   ;;  %s2328_s27 = sphi %s2394_s27, %s2847_s27   ;;  %s2324_s26 = sphi %s2392_s26, %s2849_s26   ;;  %s2320_s25 = sphi %s2390_s25, %s2851_s25   ;;  %s2316_s24 = sphi %s2388_s24, %s2850_s24  }
   0xa   : > { %s1853_s29 = sadd.s32 4294967294, %s2328_s27   ;;  %p46_p0 = scmp.ne.s32.totalorder %s2320_s25, %s2316_s24 }
   0xb   : > { %p2821_p1 = scmp.eq.s32.totalorder %s2409_s28, 0  ;;  %p207_p3 = scmp.eq.s32.totalorder %s1853_s29, 1 }
   0xc   : > { %p1854_p5 = scmp.ge.s32.totalorder %s2328_s27, 1  ;;  %p214_p7 = scmp.lt.s32.totalorder %s2328_s27, 3 }
   0xd   : > { %p2418_p4 = por %p2821_p1, %p46_p0  ;;  %p2423_p6 = por %p207_p3, %p46_p0 }
   0xe   : > { %p2428_p8 = pnand %p1854_p5, %p214_p7  ;;  %s2330_s10 = smov [#allocation7]  }
   0xf   : > { %s2830_s30 = scalar_select %p2418_p4, 1, 0 }
  0x10   : > { %s2831_s8 = scalar_select %p2423_p6, 1, 0 }
  0x11   : > { %s2832_s9 = scalar_select %p2428_p8, 1, 0 }
  0x12   : > { %s232_s11 = sshll.u32 %s2330_s10, 4  ;;  %p2080_p9 = pneg %p2428_p8  ;;  %s2432_s11 = int_to_ptr.vmem [resolvable:$true] %s232_s11 }
  0x13   : > { %s2444_s13 = sadd.s32 1, %s2328_s27   ;;  %s33_s14 = sadd.s32 1, %s2324_s26 }
  0x14   : > { %p2439_p11 = pnand %p2080_p9, %p2821_p1  ;;  %2834 = sst [smem:[#allocation14_spill]] %s2444_s13 }
  0x15   : > { %s30_s15 = ssub.s32 %s2328_s27, %s2444_s13  ;;  %s2835_s4 = sld [smem:[#allocation16_spill]] }
  0x16   : > { %p2168_p13 = pneg %p2439_p11 }
  0x1b   : > { %s2166_s18 = scalar_lea.hbm %s2835_s4, 512 }
  0x1c   : > { %p2167_p12 = scmp.ne.s32.totalorder %s2835_s4, %s2166_s18  ;;  %p2173_p5 = scmp.lt.u32.totalorder %s2166_s18, %s2835_s4 }
  0x1e   : > { %p2169_p0 = pnand %p2168_p13, %p2167_p12 }
  0x20   : > { %p2170_p3 = pneg %p2169_p0 }
  0x22   : > { %p2175_p7 = pnand %p2173_p5, %p2170_p3 }
  0x24   : > { %2178 = shalt.err (!%p2175_p7)
}
  0x25   : > { %s2179_s23 = scalar_lea.vmem %s2432_s11, 512  ;;  %p2187_p2 = scmp.lt.s32.totalorder %s2432_s11, %s2432_s11 }
  0x26   : > { %p2180_p9 = scmp.ne.s32.totalorder %s2432_s11, %s2179_s23  ;;  %p2188_p6 = scmp.lt.s32.totalorder %s2179_s23, %s2179_s23 }
  0x28   : > { %p2182_p10 = pnand %p2180_p9, %p2168_p13  ;;  %p2189_p4 = por %p2188_p6, %p2187_p2 }
  0x2a   : > { %p2183_p1 = pneg %p2182_p10 }
  0x2c   : > { %p2190_p8 = pnand %p2189_p4, %p2183_p1 }
  0x2e   : > { %2193 = shalt.err (!%p2190_p8)
}
  0x2f   : > { %s2331_s29 = smov 128   ;;  %s2332_s10 = smov 8  }
  0x30   : > { %2083 = dma.hbm_to_vmem [thread:$0]  (!%p2439_p11), %s2835_s4, 512, %s2432_s11, [#allocation6], %s2331_s29, %s2331_s29, %s2332_s10  }
  0x31   : > { %p31_p2 = scmp.eq.s32.totalorder %s30_s15, 0  ;;  %p40_p1 = scmp.ne.s32.totalorder %s2324_s26, %s2320_s25 }
  0x32   : > { %p41_p4 = scmp.eq.s32.totalorder %s2328_s27, 0  ;;  %p2096_p6 = scmp.lt.s32.totalorder %s2328_s27, 2 }
  0x33   : > { %s2475_s18 = scalar_select %p31_p2, %s2324_s26, %s33_s14  }
  0x34   : > { %p42_p8 = por %p41_p4, %p40_p1  ;;  %p2837_p10 = scmp.eq.s32.totalorder %s2409_s28, 1 }
  0x35   : > { %2836 = sst [smem:[#allocation15_spill]] %s2475_s18  ;;  %s252_s20 = sand.u32 1, %s2324_s26  }
  0x36   : > { %p2479_p12 = por %p2837_p10, %p40_p1  ;;  %s1858_s21 = sshll.u32 %s2328_s27, 7 }
  0x37   : > { %s2485_s22 = sshll.u32 %s252_s20, 3  ;;  %s2490_s11 = scalar_lea.hbm %s2813_s0, %s1858_s21 }
  0x38   : > { %s2838_s19 = scalar_select %p2479_p12, 1, 0 }
  0x39   : > { %s256_s14 = scalar_lea.vmem [#allocation2], %s2485_s22  ;;  %p2493_p11 = pnand %p2096_p6, %p42_p8 }
  0x3a   : > { %s263_s15 = sshll.u32 %s256_s14, 4  ;;  %s2502_s17 = scalar_lea.hbm %s2814_s1, %s1858_s21  ;;  %s2497_s15 = int_to_ptr.vmem [resolvable:$true] %s263_s15 }
  0x3b   : > { %s253_s12 = scalar_lea.sflag [#allocation3], %s252_s20  ;;  %s2194_s23 = scalar_lea.hbm %s2490_s11, 128 }
  0x3c   : > { %p2195_p13 = scmp.ne.s32.totalorder %s2490_s11, %s2194_s23  ;;  %p2196_p0 = pneg %p2493_p11 }
  0x3d   : > { %s2199_s18 = scalar_lea.hbm %s2813_s0, 256  ;;  %p2200_p7 = scmp.lt.u32.totalorder %s2490_s11, %s2813_s0 }
  0x3e   : > { %p2197_p3 = pnand %p2196_p0, %p2195_p13  ;;  %p2201_p9 = scmp.lt.u32.totalorder %s2199_s18, %s2194_s23 }
  0x3f   : > { %p2203_p1 = scmp.lt.u32.totalorder %s2194_s23, %s2490_s11 }
  0x40   : > { %p2198_p5 = pneg %p2197_p3  ;;  %p2202_p2 = por %p2201_p9, %p2200_p7 }
  0x42   : > { %p2204_p4 = por %p2203_p1, %p2202_p2 }
  0x44   : > { %p2205_p6 = pnand %p2204_p4, %p2198_p5 }
  0x46   : > { %2208 = shalt.err (!%p2205_p6)
}
  0x47   : > { %s2209_s20 = scalar_lea.vmem %s2497_s15, 128  ;;  %s2333_s4 = smov [#allocation2]  }
  0x48   : > { %p2210_p8 = scmp.ne.s32.totalorder %s2497_s15, %s2209_s20  ;;  %s2214_s21 = sshll.u32 %s2333_s4, 4  ;;  %s2215_s21 = int_to_ptr.vmem [resolvable:$false] %s2214_s21 }
  0x49   : > { %s2216_s26 = scalar_lea.vmem %s2215_s21, 256  ;;  %p2217_p3 = scmp.lt.s32.totalorder %s2497_s15, %s2215_s21 }
  0x4a   : > { %p2212_p10 = pnand %p2210_p8, %p2196_p0  ;;  %p2218_p7 = scmp.lt.s32.totalorder %s2216_s26, %s2209_s20 }
  0x4c   : > { %p2213_p13 = pneg %p2212_p10  ;;  %p2219_p9 = por %p2218_p7, %p2217_p3 }
  0x4e   : > { %p2220_p2 = pnand %p2219_p9, %p2213_p13 }
  0x50   : > { %2223 = shalt.err (!%p2220_p2)
}
  0x51   : > { %2087 = dma.hbm_to_vmem [thread:$0]  (!%p2493_p11), %s2490_s11, 128, %s2497_s15, %s253_s12  }
  0x52   : > { %s270_s13 = sand.u32 1, %s2328_s27   ;;  %s274_s18 = scalar_lea.vmem [#allocation5], %s2485_s22 }
  0x53   : > { %s281_s10 = sshll.u32 %s274_s18, 4  ;;  %s271_s16 = scalar_lea.sflag [#allocation6], %s270_s13  ;;  %s282_s10 = int_to_ptr.vmem [resolvable:$true] %s281_s10 }
  0x54   : > { %s2224_s23 = scalar_lea.hbm %s2502_s17, 128  ;;  %s2229_s4 = scalar_lea.hbm %s2814_s1, 256 }
  0x55   : > { %p2225_p5 = scmp.ne.s32.totalorder %s2502_s17, %s2224_s23  ;;  %p2230_p6 = scmp.lt.u32.totalorder %s2502_s17, %s2814_s1 }
  0x56   : > { %p2231_p8 = scmp.lt.u32.totalorder %s2229_s4, %s2224_s23  ;;  %p2233_p13 = scmp.lt.u32.totalorder %s2224_s23, %s2502_s17 }
  0x57   : > { %p2227_p1 = pnand %p2225_p5, %p2196_p0 }
  0x58   : > { %p2232_p10 = por %p2231_p8, %p2230_p6 }
  0x59   : > { %p2228_p4 = pneg %p2227_p1 }
  0x5a   : > { %p2234_p3 = por %p2233_p13, %p2232_p10 }
  0x5c   : > { %p2235_p7 = pnand %p2234_p3, %p2228_p4 }
  0x5e   : > { %2238 = shalt.err (!%p2235_p7)
}
  0x5f   : > { %s2239_s22 = scalar_lea.vmem %s282_s10, 128  ;;  %s2334_s11 = smov [#allocation5]  }
  0x60   : > { %p2240_p9 = scmp.ne.s32.totalorder %s282_s10, %s2239_s22  ;;  %s2244_s15 = sshll.u32 %s2334_s11, 4  ;;  %s2245_s15 = int_to_ptr.vmem [resolvable:$false] %s2244_s15 }
  0x61   : > { %s2246_s12 = scalar_lea.vmem %s2245_s15, 256  ;;  %p2247_p1 = scmp.lt.s32.totalorder %s282_s10, %s2245_s15 }
  0x62   : > { %p2242_p2 = pnand %p2240_p9, %p2196_p0  ;;  %p2248_p12 = scmp.lt.s32.totalorder %s2246_s12, %s2239_s22 }
  0x64   : > { %p2243_p5 = pneg %p2242_p2  ;;  %p2249_p6 = por %p2248_p12, %p2247_p1 }
  0x66   : > { %p2250_p8 = pnand %p2249_p6, %p2243_p5 }
  0x68   : > { %2253 = shalt.err (!%p2250_p8)
}
  0x69   : > { %2090 = dma.hbm_to_vmem [thread:$0]  (!%p2493_p11), %s2502_s17, 128, %s282_s10, %s271_s16  }
  0x6a   : > { %p2840_p4 = scmp.ne.s32.totalorder %s2832_s9, 0 }
  0x6b   : > { %s2553_s13 = sand.u32 (!%p2840_p4), 1, %s2320_s25   ;;  %p2841_p12 = scmp.ne.s32.totalorder (!%p2840_p4), %s2830_s30, 0 }
  0x6c   : > { %290 = sbr.rel (%p2840_p4) target bundleno = 2339 (0x923), region = 48  ;;  %s2556_s18 = sshll.u32 (!%p2840_p4), %s2553_s13, 3 }
  0x6d   : > { %s293_s23 = scalar_lea.sflag (!%p2840_p4), [#allocation3], %s2553_s13  ;;  %s296_s14 = scalar_lea.vmem (!%p2840_p4), [#allocation2], %s2556_s18 }
  0x73   : > { %2299 = dma.done.wait (%p2841_p12), %s293_s23, 128  }
  0x74   : > { %2301 = vsyncadd (%p2841_p12), %s293_s23, 4294967168  ;;  %s301_s9 = sand.u32 1, %s2409_s28   ;;  %s305_s17 = scalar_lea.vmem [#allocation5], %s2556_s18 }
  0x75   : > { %s302_s29 = scalar_lea.sflag [#allocation6], %s301_s9 }
  0x76   : > { %2303 = dma.done.wait (%p2841_p12), %s302_s29, 128  }
  0x77   : > { %2305 = vsyncadd (%p2841_p12), %s302_s29, 4294967168  ;;  %p2842_p11 = scmp.eq.s32.totalorder %s2409_s28, 0 }
  0x79   : > { %2307 = dma.done.wait (%p2842_p11), [#allocation6], 512   ;;  %p2843_p0 = pmov %p2842_p11 }
  0x7a   : > { %v2335_v0 = vmov 0.0   ;;  %v348_v1 = vld [vmem:[%s2815_s2 + $0x8] sm:$0xff]  ;;  %v350_v2 = vld [vmem:[%s2815_s2 + $0x18] sm:$0xff]  ;;  %v347_v3 = vld [vmem:[%s2815_s2] sm:$0xff]  ;;  %vm355_vm0 = vcmask 261120   ;;  %vm2336_vm1 = vmmov 0   ;;  %v437_v21 = vlaneseq }
  0x7b   : > { %2309 = vsyncadd (%p2843_p0), [#allocation6], 4294966784  ;;  %423 = vmatprep.mubr.f32.mxu1 %v2335_v0  ;;  %1947 = vmatprep.subr.mxu0 %v2335_v0  ;;  %v2038_v4 = vpack.c.bf16 %v350_v2, %v348_v1  ;;  %v349_v5 = vld [vmem:[%s2815_s2 + $0x10] sm:$0xff]  ;;  %v352_v6 = vld [vmem:[%s2815_s2 + $0x28] sm:$0xff]  ;;  %s2337_s20 = smov 104   ;;  %s2338_s4 = smov 120  }
  0x7c   : > { %v354_v7 = vld [vmem:[%s2815_s2 + $0x38] sm:$0xff]  ;;  %v2040_v8 = vpack.c.bf16 %v349_v5, %v347_v3  ;;  %v351_v10 = vld [vmem:[%s2815_s2 + $0x20] sm:$0xff]  ;;  %v353_v11 = vld [vmem:[%s2815_s2 + $0x30] sm:$0xff]  ;;  %1949 = vmatprep.mubr.msk.f32.mxu0 %vm2336_vm1, %v2335_v0  ;;  %s2340_s30 = smov 112   ;;  %s2341_s21 = smov 32   ;;  %vm454_vm2 = vcmask 64512  }
  0x7d   : > { %v2042_v9 = vpack.c.bf16 %v354_v7, %v352_v6  ;;  %2039 = vmatprep.subr.bf16.mxu1 %v2038_v4  ;;  %v2044_v12 = vpack.c.bf16 %v353_v11, %v351_v10  ;;  %v2600_v13 = vld [vmem:[%s296_s14] sm:$0xff]  ;;  %s2339_s14 = smov 96   ;;  %s2342_s26 = smov 64   ;;  %v2622_v24 = vshrl.u32 %v437_v21, 7  ;;  %v1069_v42 = vld [vmem:[%s305_s17] sm:$0xff]  ;;  %vm1430_vm4 = vcmask 130048  }
  0x7e   : > { %2041 = vmatpush1.bf16.msra.mxu1 %v2040_v8  ;;  %v2637_v29 = vld [vmem:[%s2819_s6] sm:$0xff]  ;;  %vm1070_vm3 = vcmp.gt.f32.partialorder %v1069_v42, 0.5  ;;  %vm1432_vm5 = vcmask 195584   ;;  %vm1636_vm6 = vcmask 523264   ;;  %s1738_s15 = scalar_lea.sflag [#allocation4], %s2553_s13  ;;  %p2844_p13 = scmp.ne.s32.totalorder %s2838_s19, 0 }
  0x7f   : > { %2043 = vmatprep.subr.bf16.mxu1 %v2042_v9  ;;  %v439_v27 = vsub.s32 0, %v2622_v24 }
  0x81   : > { %v440_v31 = vrot.slane %v2637_v29, %v439_v27  ;;  %v1435_v27 = vld [vmem:[%s2816_s3 + $0x8] sm:$0xff] }
  0x82   : > { %2045 = vmatpush1.bf16.msra.mxu1 %v2044_v12 }
  0x83   : > { %1937 = vmatprep.subr.mxu1 %v2335_v0 }
  0x85   : > { %1866 = vmatmul.mubr.msk.f32.vlgmr.msra.gmra.mrb[0].mxu1 %vm355_vm0, %v2600_v13 }
  0x86   : > { %1939 = vmatprep.mubr.msk.f32.mxu1 %vm2336_vm1, %v2335_v0 }
 0x158   : > { %v425_v14 = vpop.f32.mrb[0].mxu1 }
 0x159   : > { %435 = vrot.lane.b32.xlu1 %v425_v14, %s2337_s20  ;;  %431 = vrot.lane.b32.xlu0 %v425_v14, %s2338_s4  ;;  %v2611_v15 = vpop.f32.mrb[1].mxu1 }
 0x15a   : > { %v441_v34 = vadd.f32 %v440_v31, %v2611_v15 }
 0x15d   : > { %452 = vrot.lane.b32.xlu1 %v425_v14, %s2339_s14  ;;  %433 = vrot.lane.b32.xlu0 %v425_v14, %s2340_s30 }
 0x161   : > { %759 = vrot.lane.b32.xlu1 %v425_v14, %s2341_s21 }
 0x1cb   : > { %v436_v16 = vpop.permute.xlu1 %435  ;;  %v432_v17 = vpop.permute.xlu0 %431 }
 0x1cc   : > { %529 = vrot.lane.b32.xlu0 %v432_v17, %s2339_s14 }
 0x1cf   : > { %v453_v18 = vpop.permute.xlu1 %452  ;;  %v434_v19 = vpop.permute.xlu0 %433 }
 0x1d0   : > { %1938 = vmatpush3.xpose.msk.msra.mxu1 %vm454_vm2, %v453_v18  ;;  %681 = vrot.lane.b32.xlu0 %v436_v16, %s2339_s14 }
 0x1d1   : > { %605 = vrot.lane.b32.xlu1 %v434_v19, %s2339_s14  ;;  %1942 = vmatprep.subr.mxu1 %v2335_v0  ;;  %s2346_s14 = smov 24  }
 0x1d3   : > { %1940 = vmatmul.mubr.msk.f32.vlgmr.msra.gmra.mrb[2].mxu1 %vm454_vm2, %v425_v14  ;;  %v760_v22 = vpop.permute.xlu1 %759 }
 0x1d4   : > { %837 = vrot.lane.b32.xlu0 %v432_v17, %s2341_s21  ;;  %1944 = vmatprep.mubr.msk.f32.mxu1 %vm2336_vm1, %v2335_v0 }
 0x1d5   : > { %757 = vrot.lane.b32.xlu1 %v425_v14, %s2342_s26 }
 0x1d8   : > { %835 = vrot.lane.b32.xlu0 %v432_v17, %s2342_s26 }
 0x1d9   : > { %915 = vrot.lane.b32.xlu1 %v434_v19, %s2341_s21 }
 0x1dc   : > { %993 = vrot.lane.b32.xlu0 %v436_v16, %s2341_s21  ;;  %s344_s21 = scalar_lea.vmem [#allocation8], %s2556_s18 }
 0x1dd   : > { %913 = vrot.lane.b32.xlu1 %v434_v19, %s2342_s26 }
 0x1e0   : > { %991 = vrot.lane.b32.xlu0 %v436_v16, %s2342_s26  ;;  %s1751_s26 = sshll.u32 %s344_s21, 4  ;;  %s2770_s26 = int_to_ptr.vmem [resolvable:$true] %s1751_s26 }
 0x1e1   : > { %s2254_s12 = scalar_lea.vmem %s2770_s26, 128 }
 0x1e2   : > { %p2255_p10 = scmp.ne.s32.totalorder %s2770_s26, %s2254_s12 }
 0x1e4   : > { %p2256_p3 = pnand %p2255_p10, %p2844_p13 }
 0x1e6   : > { %p2257_p7 = pneg %p2256_p3 }
 0x23e   : > { %v530_v20 = vpop.permute.xlu0 %529 }
 0x23f   : > { %1943 = vmatpush3.xpose.msk.msra.mxu1 %vm454_vm2, %v530_v20 }
 0x240   : > { %1952 = vmatprep.subr.mxu1 %v2335_v0 }
 0x242   : > { %1945 = vmatmul.mubr.msk.f32.vlgmr.msra.gmra.mrb[4].mxu1 %vm454_vm2, %v432_v17  ;;  %v682_v23 = vpop.permute.xlu0 %681 }
 0x243   : > { %v606_v25 = vpop.permute.xlu1 %605  ;;  %1953 = vmatpush3.xpose.msk.msra.mxu1 %vm454_vm2, %v682_v23  ;;  %1954 = vmatprep.mubr.msk.f32.mxu1 %vm2336_vm1, %v2335_v0 }
 0x244   : > { %1948 = vmatpush3.xpose.msk.msra.mxu0 %vm454_vm2, %v606_v25  ;;  %1962 = vmatprep.subr.mxu1 %v2335_v0 }
 0x245   : > { %1957 = vmatprep.subr.mxu0 %v2335_v0 }
 0x246   : > { %1955 = vmatmul.mubr.msk.f32.vlgmr.msra.gmra.mrb[6].mxu1 %vm454_vm2, %v436_v16  ;;  %v838_v26 = vpop.permute.xlu0 %837 }
 0x247   : > { %1950 = vmatmul.mubr.msk.f32.vlgmr.msra.gmra.mrb[0].mxu0 %vm454_vm2, %v434_v19  ;;  %v758_v28 = vpop.permute.xlu1 %757  ;;  %1963 = vmatpush3.xpose.msk.msra.mxu1 %vm454_vm2, %v838_v26  ;;  %v1434_v26 = vld [vmem:[%s2816_s3] sm:$0xff] }
 0x248   : > { %1958 = vmatpush3.xpose.msk.msra.mxu0 %vm454_vm2, %v760_v22  ;;  %1959 = vmatprep.mubr.msk.f32.mxu0 %vm2336_vm1, %v2335_v0  ;;  %v2047_v31 = vpack.c.bf16 %v1435_v27, %v1434_v26  ;;  %v1534_v26 = vsub.s32 4, %v2622_v24  ;;  %v1539_v27 = vsub.s32 5, %v2622_v24 }
 0x249   : > { %1967 = vmatprep.subr.mxu0 %v2335_v0  ;;  %1964 = vmatprep.mubr.msk.f32.mxu1 %vm2336_vm1, %v2335_v0 }
 0x24a   : > { %v836_v30 = vpop.permute.xlu0 %835  ;;  %1972 = vmatprep.subr.mxu1 %v2335_v0 }
 0x24b   : > { %1960 = vmatmul.mubr.msk.f32.vlgmr.msra.gmra.mrb[2].mxu0 %vm454_vm2, %v758_v28  ;;  %v916_v32 = vpop.permute.xlu1 %915  ;;  %1965 = vmatmul.mubr.msk.f32.vlgmr.msra.gmra.mrb[8].mxu1 %vm454_vm2, %v836_v30  ;;  %v1436_v28 = vld [vmem:[%s2816_s3 + $0x10] sm:$0xff]  ;;  %v2343_v30 = vmov 0.0|0.0  }
 0x24c   : > { %1968 = vmatpush3.xpose.msk.msra.mxu0 %vm454_vm2, %v916_v32  ;;  %1969 = vmatprep.mubr.msk.f32.mxu0 %vm2336_vm1, %v2335_v0  ;;  %v1437_v32 = vld [vmem:[%s2816_s3 + $0x18] sm:$0xff] }
 0x24d   : > { %1977 = vmatprep.subr.mxu0 %v2335_v0  ;;  %1974 = vmatprep.mubr.msk.f32.mxu1 %vm2336_vm1, %v2335_v0 }
 0x24e   : > { %v994_v33 = vpop.permute.xlu0 %993 }
 0x24f   : > { %v914_v35 = vpop.permute.xlu1 %913  ;;  %1973 = vmatpush3.xpose.msk.msra.mxu1 %vm454_vm2, %v994_v33  ;;  %v2050_v33 = vpack.c.bf16 %v1437_v32, %v1436_v28 }
 0x250   : > { %1970 = vmatmul.mubr.msk.f32.vlgmr.msra.gmra.mrb[4].mxu0 %vm454_vm2, %v914_v35  ;;  %1982 = vmatprep.subr.mxu1 %v2335_v0 }
 0x251   : > { %1978 = vmatpush3.msra.mxu0 %v441_v34  ;;  %1979 = vmatprep.mubr.msk.f32.mxu0 %vm2336_vm1, %v2335_v0 }
 0x252   : > { %v992_v36 = vpop.permute.xlu0 %991  ;;  %1987 = vmatprep.subr.mxu0 %v2335_v0 }
 0x253   : > { %1975 = vmatmul.mubr.msk.f32.vlgmr.msra.gmra.mrb[10].mxu1 %vm454_vm2, %v992_v36 }
 0x254   : > { %1984 = vmatprep.mubr.msk.f32.mxu1 %vm2336_vm1, %v2335_v0 }
 0x2a6   : > { %v525_v37 = vpop.f32.mrb[2].mxu1 }
 0x2a7   : > { %v1941_v38 = vpop.f32.mrb[3].mxu1 }
 0x315   : > { %v601_v39 = vpop.f32.mrb[4].mxu1 }
 0x316   : > { %v1946_v40 = vpop.f32.mrb[5].mxu1 }
 0x319   : > { %v753_v41 = vpop.f32.mrb[6].mxu1 }
 0x31a   : > { %v677_v43 = vpop.f32.mrb[0].mxu0  ;;  %v1956_v44 = vpop.f32.mrb[7].mxu1 }
 0x31b   : > { %v1951_v45 = vpop.f32.mrb[1].mxu0 }
 0x31e   : > { %v831_v46 = vpop.f32.mrb[2].mxu0  ;;  %v909_v47 = vpop.f32.mrb[8].mxu1 }
 0x31f   : > { %v1961_v48 = vpop.f32.mrb[3].mxu0  ;;  %v1966_v49 = vpop.f32.mrb[9].mxu1  ;;  %v1073_v50 = vsel %vm1070_vm3, %v525_v37, %v831_v46  ;;  %v1074_v51 = vsel %vm1070_vm3, %v601_v39, %v909_v47 }
 0x320   : > { %v1077_v52 = vsel %vm454_vm2, %v1073_v50, -inf  ;;  %v1080_v53 = vsel %vm454_vm2, %v1074_v51, -inf }
 0x321   : > { %1078 = vmax.xlane.f32.xlu1 %v1077_v52  ;;  %1081 = vmax.xlane.f32.xlu0 %v1080_v53 }
 0x323   : > { %v987_v54 = vpop.f32.mrb[4].mxu0 }
 0x324   : > { %v1971_v55 = vpop.f32.mrb[5].mxu0  ;;  %v1075_v56 = vsel %vm1070_vm3, %v677_v43, %v987_v54 }
 0x325   : > { %v1083_v57 = vsel %vm454_vm2, %v1075_v56, -inf }
 0x326   : > { %1084 = vmax.xlane.f32.xlu0 %v1083_v57  ;;  %v1065_v58 = vpop.f32.mrb[10].mxu1 }
 0x327   : > { %v1976_v59 = vpop.f32.mrb[11].mxu1  ;;  %v1076_v60 = vsel %vm1070_vm3, %v753_v41, %v1065_v58  ;;  %v1440_v58 = vsub.s32 1, %v2622_v24 }
 0x328   : > { %v1086_v61 = vsel %vm454_vm2, %v1076_v60, -inf }
 0x329   : > { %v1441_v59 = vrot.slane %v2637_v29, %v1440_v58 }
 0x332   : > { %446 = vrot.lane.b32.xlu1 %v441_v34, %s2340_s30  ;;  %s1891_s30 = sshll.u32 %s2409_s28, 7  ;;  %s2347_s28 = smov [#allocation8]  }
 0x333   : > { %s2768_s17 = scalar_lea.hbm %s2820_s7, %s1891_s30  ;;  %s2258_s18 = sshll.u32 %s2347_s28, 4  ;;  %s2259_s18 = int_to_ptr.vmem [resolvable:$false] %s2258_s18 }
 0x334   : > { %s2260_s23 = scalar_lea.vmem %s2259_s18, 256  ;;  %p2261_p9 = scmp.lt.s32.totalorder %s2770_s26, %s2259_s18 }
 0x335   : > { %p2262_p2 = scmp.lt.s32.totalorder %s2260_s23, %s2254_s12 }
 0x337   : > { %p2263_p5 = por %p2262_p2, %p2261_p9 }
 0x339   : > { %p2264_p1 = pnand %p2263_p5, %p2257_p7 }
 0x33c   : > { %443 = vrot.lane.b32.xlu0 %v441_v34, %s2338_s4  ;;  %s2345_s4 = smov 16  }
 0x356   : > { %1087 = vmax.xlane.f32.xlu1 %v1086_v61 }
 0x367   : > { %449 = vrot.lane.b32.xlu1 %v441_v34, %s2337_s20  ;;  %s2344_s20 = smov 8  }
 0x3ae   : > { %v1079_v62 = vpop.xlane.xlu1 %1078  ;;  %v1082_v63 = vpop.xlane.xlu0 %1081 }
 0x3af   : > { %v1089_v1 = vsub.f32 %v1073_v50, %v1079_v62  ;;  %v1090_v2 = vsub.f32 %v1074_v51, %v1082_v63 }
 0x3b1   : > { %v1093_v3 = vmul.f32 1.442695, %v1089_v1  ;;  %v1095_v4 = vmul.f32 1.442695, %v1090_v2 }
 0x3b2   : > { %v447_v11 = vpop.permute.xlu1 %446 }
 0x3b3   : > { %2146 = vpow2.f32 %v1093_v3  ;;  %v1085_v5 = vpop.xlane.xlu0 %1084 }
 0x3b4   : > { %2148 = vpow2.f32 %v1095_v4  ;;  %v1091_v6 = vsub.f32 %v1075_v56, %v1085_v5  ;;  %v1542_v4 = vld [vmem:[#allocation7] sm:$0xff]  ;;  %v1543_v5 = vld [vmem:[#allocation7 + $0x8] sm:$0xff] }
 0x3b6   : > { %v1097_v7 = vmul.f32 1.442695, %v1091_v6  ;;  %v2053_v6 = vpack.c.bf16 %v1543_v5, %v1542_v4 }
 0x3b7   : > { %v444_v8 = vpop.permute.xlu0 %443 }
 0x3b8   : > { %2150 = vpow2.f32 %v1097_v7  ;;  %1983 = vmatpush3.msra.mxu1 %v444_v8  ;;  %v1545_v7 = vld [vmem:[#allocation7 + $0x18] sm:$0xff] }
 0x3b9   : > { %1992 = vmatprep.subr.mxu1 %v2335_v0 }
 0x3bd   : > { %v2147_v9 = vpop.eup %2146 }
 0x3be   : > { %v2149_v10 = vpop.eup %2148  ;;  %1980 = vmatmul.mubr.msk.f32.vlgmr.msra.gmra.mrb[6].mxu0 %vm454_vm2, %v2147_v9  ;;  %v1101_v22 = vsel %vm454_vm2, %v2147_v9, 0.0  ;;  %v1625_v9 = vld [vmem:[%s2818_s5 + $0x8] sm:$0xff] }
 0x3bf   : > { %1988 = vmatpush3.msra.mxu0 %v447_v11  ;;  %1985 = vmatmul.mubr.msk.f32.vlgmr.msra.gmra.mrb[12].mxu1 %vm454_vm2, %v2149_v10  ;;  %v1104_v12 = vsel %vm454_vm2, %v2149_v10, 0.0  ;;  %v1626_v10 = vld [vmem:[%s2818_s5 + $0x10] sm:$0xff] }
 0x3c0   : > { %1105 = vadd.xlane.f32.xlu0 %v1104_v12  ;;  %1989 = vmatprep.mubr.msk.f32.mxu0 %vm2336_vm1, %v2335_v0  ;;  %v1627_v12 = vld [vmem:[%s2818_s5 + $0x18] sm:$0xff] }
 0x3c1   : > { %1994 = vmatprep.mubr.msk.f32.mxu1 %vm2336_vm1, %v2335_v0  ;;  %2046 = vmatprep.subr.bf16.mxu0 %v2343_v30 }
 0x3c2   : > { %v2151_v14 = vpop.eup %2150 }
 0x3c3   : > { %1990 = vmatmul.mubr.msk.f32.vlgmr.msra.gmra.mrb[8].mxu0 %vm454_vm2, %v2151_v14  ;;  %v1107_v15 = vsel %vm454_vm2, %v2151_v14, 0.0  ;;  %v2062_v14 = vpack.c.bf16 %v1627_v12, %v1626_v10 }
 0x3c4   : > { %1108 = vadd.xlane.f32.xlu1 %v1107_v15  ;;  %2005 = vmatprep.mubr.msk.f32.mxu0 %vm2336_vm1, %v2335_v0  ;;  %v1628_v15 = vld [vmem:[%s2818_s5 + $0x20] sm:$0xff] }
 0x3c5   : > { %2048 = vmatpush3.bf16.msra.mxu0 %v2047_v31  ;;  %v1535_v31 = vrot.slane %v2637_v29, %v1534_v26 }
 0x3c6   : > { %2049 = vmatprep.subr.bf16.mxu0 %v2343_v30 }
 0x3c9   : > { %2051 = vmatpush3.bf16.msra.mxu0 %v2050_v33 }
 0x3ca   : > { %2058 = vmatprep.subr.bf16.mxu0 %v2343_v30 }
 0x3e3   : > { %v1088_v16 = vpop.xlane.xlu1 %1087 }
 0x3e4   : > { %v1092_v17 = vsub.f32 %v1076_v60, %v1088_v16  ;;  %v1629_v16 = vld [vmem:[%s2818_s5 + $0x28] sm:$0xff] }
 0x3e6   : > { %v1099_v18 = vmul.f32 1.442695, %v1092_v17  ;;  %v2065_v17 = vpack.c.bf16 %v1629_v16, %v1628_v15 }
 0x3e7   : > { %v450_v19 = vpop.permute.xlu1 %449 }
 0x3e8   : > { %2152 = vpow2.f32 %v1099_v18  ;;  %1993 = vmatpush3.msra.mxu1 %v450_v19 }
 0x3e9   : > { %2052 = vmatprep.subr.bf16.mxu1 %v2343_v30 }
 0x3f2   : > { %v2153_v20 = vpop.eup %2152 }
 0x3f3   : > { %1995 = vmatmul.mubr.msk.f32.vlgmr.msra.gmra.mrb[14].mxu1 %vm454_vm2, %v2153_v20  ;;  %v1110_v21 = vsel %vm454_vm2, %v2153_v20, 0.0 }
 0x3f4   : > { %1111 = vadd.xlane.f32.xlu0 %v1110_v21  ;;  %2016 = vmatprep.mubr.msk.f32.mxu1 %vm2336_vm1, %v2335_v0 }
 0x3f5   : > { %2054 = vmatpush3.bf16.msra.mxu1 %v2053_v6 }
 0x3f6   : > { %2055 = vmatprep.subr.bf16.mxu1 %v2343_v30 }
 0x3f8   : > { %1102 = vadd.xlane.f32.xlu0 %v1101_v22 }
 0x44d   : > { %v1106_v23 = vpop.xlane.xlu0 %1105 }
 0x44e   : > { %2154 = vrcp.f32 %v1106_v23 }
 0x451   : > { %v1109_v25 = vpop.xlane.xlu1 %1108 }
 0x452   : > { %2156 = vrcp.f32 %v1109_v25 }
 0x458   : > { %v2155_v35 = vpop.eup %2154 }
 0x45c   : > { %v2157_v40 = vpop.eup %2156 }
 0x481   : > { %v1112_v44 = vpop.xlane.xlu0 %1111 }
 0x482   : > { %2158 = vrcp.f32 %v1112_v44 }
 0x485   : > { %v1103_v49 = vpop.xlane.xlu0 %1102 }
 0x486   : > { %2160 = vrcp.f32 %v1103_v49 }
 0x48c   : > { %v2159_v45 = vpop.eup %2158 }
 0x490   : > { %v2161_v50 = vpop.eup %2160 }
 0x491   : > { %v1182_v34 = vpop.f32.mrb[6].mxu0 }
 0x492   : > { %v1981_v36 = vpop.f32.mrb[7].mxu0  ;;  %v1255_v37 = vpop.f32.mrb[12].mxu1  ;;  %v1413_v52 = vmul.f32 %v2161_v50, %v1182_v34  ;;  %v1540_v34 = vrot.slane %v2637_v29, %v1539_v27 }
 0x493   : > { %v1414_v38 = vmul.f32 %v2155_v35, %v1255_v37  ;;  %v1986_v39 = vpop.f32.mrb[13].mxu1  ;;  %v1630_v36 = vld [vmem:[%s2818_s5 + $0x30] sm:$0xff]  ;;  %v1631_v37 = vld [vmem:[%s2818_s5 + $0x38] sm:$0xff] }
 0x494   : > { %v1548_v39 = vsub.s32 2, %v2622_v24 }
 0x495   : > { %1418 = vrot.lane.b32.xlu1 %v1414_v38, %s2344_s20  ;;  %v2068_v38 = vpack.c.bf16 %v1631_v37, %v1630_v36 }
 0x496   : > { %v1328_v41 = vpop.f32.mrb[8].mxu0 }
 0x497   : > { %v1415_v42 = vmul.f32 %v2157_v40, %v1328_v41  ;;  %v1991_v43 = vpop.f32.mrb[9].mxu0  ;;  %v1549_v40 = vrot.slane %v2637_v29, %v1548_v39 }
 0x499   : > { %1422 = vrot.lane.b32.xlu0 %v1415_v42, %s2345_s4 }
 0x4c6   : > { %v1401_v46 = vpop.f32.mrb[14].mxu1 }
 0x4c7   : > { %v1416_v47 = vmul.f32 %v2159_v45, %v1401_v46  ;;  %v1996_v48 = vpop.f32.mrb[15].mxu1  ;;  %v1634_v45 = vsub.s32 3, %v2622_v24 }
 0x4c9   : > { %1426 = vrot.lane.b32.xlu1 %v1416_v47, %s2346_s14  ;;  %v1635_v46 = vrot.slane %v2637_v29, %v1634_v45 }
 0x507   : > { %v1419_v51 = vpop.permute.xlu1 %1418 }
 0x508   : > { %v1429_v54 = vsel %vm454_vm2, %v1413_v52, %v1419_v51 }
 0x50b   : > { %v1423_v53 = vpop.permute.xlu0 %1422 }
 0x50c   : > { %v1431_v55 = vsel %vm1430_vm4, %v1429_v54, %v1423_v53 }
 0x53b   : > { %v1427_v56 = vpop.permute.xlu1 %1426 }
 0x53c   : > { %v1433_v57 = vsel %vm1432_vm5, %v1431_v55, %v1427_v56 }
 0x53d   : > { %2006 = vmatmul.mubr.msk.f32.vlgmr.msra.gmra.mrb[10].mxu0 %vm355_vm0, %v1433_v57 }
 0x53e   : > { %2035 = vmatprep.mubr.msk.f32.mxu0 %vm2336_vm1, %v2335_v0  ;;  %v1544_v0 = vld [vmem:[#allocation7 + $0x10] sm:$0xff] }
 0x53f   : > { %v2056_v8 = vpack.c.bf16 %v1545_v7, %v1544_v0 }
 0x541   : > { %2057 = vmatpush3.bf16.msra.mxu1 %v2056_v8 }
 0x610   : > { %v1511_v60 = vpop.f32.mrb[10].mxu0 }
 0x611   : > { %v1512_v61 = vadd.f32 %v1511_v60, %v1441_v59  ;;  %v2007_v62 = vpop.f32.mrb[11].mxu0 }
 0x612   : > { %v1733_v62 = vsub.s32 7, %v2622_v24 }
 0x613   : > { %v1515_v63 = vadd.f32 %v1512_v61, %v2600_v13  ;;  %v1624_v13 = vld [vmem:[%s2818_s5] sm:$0xff]  ;;  %v1728_v61 = vsub.s32 6, %v2622_v24 }
 0x614   : > { %v2059_v11 = vpack.c.bf16 %v1625_v9, %v1624_v13  ;;  %v1734_v4 = vrot.slane %v2637_v29, %v1733_v62 }
 0x615   : > { %v1516_v1 = vsel %vm355_vm0, %v1515_v63, 0.0  ;;  %v1521_v2 = vmul.f32 %v1515_v63, %v1515_v63 }
 0x616   : > { %1517 = vadd.xlane.f32.xlu1 %v1516_v1  ;;  %2060 = vmatpush3.bf16.msra.mxu0 %v2059_v11  ;;  %v1729_v1 = vrot.slane %v2637_v29, %v1728_v61 }
 0x617   : > { %v1522_v3 = vsel %vm355_vm0, %v1521_v2, 0.0  ;;  %2061 = vmatprep.subr.bf16.mxu0 %v2343_v30 }
 0x618   : > { %1523 = vadd.xlane.f32.xlu0 %v1522_v3 }
 0x61a   : > { %2063 = vmatpush3.bf16.msra.mxu0 %v2062_v14 }
 0x61b   : > { %2064 = vmatprep.subr.bf16.mxu0 %v2343_v30 }
 0x61e   : > { %2066 = vmatpush3.bf16.msra.mxu0 %v2065_v17 }
 0x61f   : > { %2067 = vmatprep.subr.bf16.mxu0 %v2343_v30 }
 0x622   : > { %2069 = vmatpush3.bf16.msra.mxu0 %v2068_v38 }
 0x6a3   : > { %v1518_v18 = vpop.xlane.xlu1 %1517 }
 0x6a4   : > { %v1520_v19 = vmul.f32 0.03125, %v1518_v18 }
 0x6a5   : > { %v1524_v20 = vpop.xlane.xlu0 %1523 }
 0x6a6   : > { %v1526_v21 = vmul.f32 %v1520_v19, %v1520_v19  ;;  %v1525_v22 = vmul.f32 0.03125, %v1524_v20  ;;  %v1528_v28 = vsub.f32 %v1515_v63, %v1520_v19 }
 0x6a8   : > { %v1527_v23 = vsub.f32 %v1525_v22, %v1526_v21 }
 0x6aa   : > { %v1529_v25 = vadd.f32 1e-05, %v1527_v23 }
 0x6ac   : > { %2162 = vrsqrt.f32 %v1529_v25 }
 0x6b6   : > { %v2163_v32 = vpop.eup %2162 }
 0x6b7   : > { %v1531_v33 = vmul.f32 %v2163_v32, %v1528_v28 }
 0x6b9   : > { %v1536_v30 = vmul.f32 %v1535_v31, %v1531_v33 }
 0x6bb   : > { %v1541_v35 = vadd.f32 %v1540_v34, %v1536_v30 }
 0x6bd   : > { %2017 = vmatmul.mubr.msk.f32.vlgmr.msra.gmra.mrb[16].mxu1 %vm355_vm0, %v1541_v35 }
 0x790   : > { %v1619_v41 = vpop.f32.mrb[16].mxu1 }
 0x791   : > { %v1620_v42 = vadd.f32 %v1619_v41, %v1549_v40  ;;  %v2018_v43 = vpop.f32.mrb[17].mxu1 }
 0x793   : > { %v1623_v44 = vmax.f32 %v1620_v42, 0.0 }
 0x795   : > { %2036 = vmatmul.mubr.msk.f32.vlgmr.msra.gmra.mrb[12].mxu0 %vm1636_vm6, %v1623_v44 }
 0x868   : > { %v1706_v47 = vpop.f32.mrb[12].mxu0 }
 0x869   : > { %v1707_v48 = vadd.f32 %v1706_v47, %v1635_v46  ;;  %v2037_v49 = vpop.f32.mrb[13].mxu0 }
 0x86b   : > { %v1710_v50 = vadd.f32 %v1707_v48, %v1541_v35 }
 0x86d   : > { %v1711_v51 = vsel %vm355_vm0, %v1710_v50, 0.0  ;;  %v1715_v52 = vmul.f32 %v1710_v50, %v1710_v50 }
 0x86e   : > { %1712 = vadd.xlane.f32.xlu0 %v1711_v51 }
 0x86f   : > { %v1716_v53 = vsel %vm355_vm0, %v1715_v52, 0.0 }
 0x870   : > { %1717 = vadd.xlane.f32.xlu1 %v1716_v53 }
 0x8fb   : > { %v1713_v54 = vpop.xlane.xlu0 %1712 }
 0x8fc   : > { %v1714_v55 = vmul.f32 0.03125, %v1713_v54 }
 0x8fd   : > { %v1718_v56 = vpop.xlane.xlu1 %1717 }
 0x8fe   : > { %v1720_v57 = vmul.f32 %v1714_v55, %v1714_v55  ;;  %v1719_v58 = vmul.f32 0.03125, %v1718_v56  ;;  %v1722_v63 = vsub.f32 %v1710_v50, %v1714_v55 }
 0x900   : > { %v1721_v59 = vsub.f32 %v1719_v58, %v1720_v57 }
 0x902   : > { %v1723_v60 = vadd.f32 1e-05, %v1721_v59 }
 0x904   : > { %2164 = vrsqrt.f32 %v1723_v60 }
 0x90e   : > { %v2165_v2 = vpop.eup %2164 }
 0x90f   : > { %v1725_v3 = vmul.f32 %v2165_v2, %v1722_v63 }
 0x911   : > { %v1730_v5 = vmul.f32 %v1729_v1, %v1725_v3 }
 0x913   : > { %v1735_v6 = vadd.f32 %v1734_v4, %v1730_v5 }
 0x915   : > { %1736 = vst.msk [vmem:[%s344_s21] sm:$0xff] %vm355_vm0, %v1735_v6 }
 0x916   : > { %2267 = shalt.err (!%p2264_p1)
}
 0x917   : > { %s2268_s13 = scalar_lea.hbm %s2768_s17, 128  ;;  %s2272_s10 = scalar_lea.hbm %s2820_s7, 256 }
 0x918   : > { %p2269_p6 = scmp.ne.s32.totalorder %s2768_s17, %s2268_s13  ;;  %p2273_p12 = scmp.lt.u32.totalorder %s2768_s17, %s2820_s7 }
 0x919   : > { %p2274_p11 = scmp.lt.u32.totalorder %s2272_s10, %s2268_s13  ;;  %p2276_p10 = scmp.lt.u32.totalorder %s2268_s13, %s2768_s17 }
 0x91a   : > { %p2270_p8 = pnand %p2269_p6, %p2844_p13 }
 0x91b   : > { %p2275_p0 = por %p2274_p11, %p2273_p12 }
 0x91c   : > { %p2271_p4 = pneg %p2270_p8 }
 0x91d   : > { %p2277_p3 = por %p2276_p10, %p2275_p0 }
 0x91f   : > { %p2278_p7 = pnand %p2277_p3, %p2271_p4 }
 0x921   : > { %2281 = shalt.err (!%p2278_p7)
}
 0x922   : > { %2078 = dma.vmem_to_hbm [thread:$0]  (%p2844_p13), %s2770_s26, 128, %s2768_s17, %s1738_s15  }
 0x923 PF: > { %s1763_s4 = sand.u32 1, %s2316_s24   ;;  %p2845_p9 = scmp.ne.s32.totalorder %s2831_s8, 0 }
 0x924   : > { %p2846_p2 = scmp.ge.s32.totalorder %s2328_s27, 2  ;;  %s1764_s14 = scalar_lea.sflag [#allocation4], %s1763_s4 }
 0x926   : > { %p2092_p5 = pnand %p2846_p2, %p2845_p9 }
 0x928   : > { %2311 = dma.done.wait (!%p2092_p5), %s1764_s14, 128  }
 0x929   : > { %2313 = vsyncadd (!%p2092_p5), %s1764_s14, 4294967168  ;;  %s2847_s27 = sld [smem:[#allocation14_spill]]  ;;  %s2848_s30 = sld [smem:[#allocation13_spill]] }
 0x92a   : > { %s2849_s26 = sld [smem:[#allocation15_spill]]  ;;  %s2850_s24 = smov %s2320_s25 }
 0x92f   : > { %p23_p1 = scmp.ge.s32.totalorder %s2847_s27, 4   ;;  %s2851_s25 = smov %s2848_s30 }
 0x931   :  { %25 = sbr.rel (!%p23_p1) target bundleno = 9 (0x9), region = 110 }
 0x938   :  { %1769 = vsyncpa [#allocation3], 1 }
 0x939   :  { %1771 = vsyncpa [#allocation3 + $0x1], 1 }
 0x93a   :  { %1772 = vsyncpa [#allocation6], 1 }
 0x93b   :  { %1774 = vsyncpa [#allocation6 + $0x1], 1 }
 0x93c   :  { %1775 = vsyncpa [#allocation4], 1 }
 0x93d   :  { %1777 = vsyncpa [#allocation4 + $0x1], 1 }

</bundles_post_ra>
